<compile_context>
chip_gen: v6e
topology: v6e:2x2x1
jax: 0.10.0
libtpu: 0.0.40
codegen_flags: <defaults>
</compile_context>

<pallas_src>
import functools
import math

import jax
import jax.numpy as jnp
from jax import lax
from jax.experimental import pallas as pl
from jax.experimental.pallas import tpu as pltpu


def _stats_kernel(ignore_index, logits_ref, target_ref, nll_ref, valid_ref):
    x = logits_ref[...].astype(jnp.float32)              # (C, tile_hw)
    t = target_ref[...]                                   # (1, tile_hw) int32
    valid = t != ignore_index
    t_safe = jnp.where(valid, t, 0)

    m = jnp.max(x, axis=0, keepdims=True)                 # (1, tile_hw)
    lse = m + jnp.log(jnp.sum(jnp.exp(x - m), axis=0, keepdims=True))

    c, thw = x.shape
    onehot = lax.broadcasted_iota(jnp.int32, (c, thw), 0) == t_safe
    x_t = jnp.sum(jnp.where(onehot, x, 0.0), axis=0, keepdims=True)

    nll = lse - x_t                                        # -log_softmax @ gt class
    # nll_eff == -log(mask_prob): 0 for ignored pixels (mask_prob := 1 in torch)
    nll_ref[...] = jnp.where(valid, nll, 0.0)
    valid_ref[...] = valid.astype(jnp.float32)


def _loss_kernel(scalars_ref, nll_ref, valid_ref, out_ref, acc_ref):
    bi = pl.program_id(0)
    ti = pl.program_id(1)

    @pl.when(jnp.logical_and(bi == 0, ti == 0))
    def _():
        acc_ref[0] = jnp.float32(0.0)
        acc_ref[1] = jnp.float32(0.0)

    nll_thr = scalars_ref[0]   # keep iff nll_eff >= nll_thr  (== mask_prob <= threshold)
    use_ohem = scalars_ref[1]

    nll = nll_ref[...]          # (1, tile_hw), lane-dense
    valid = valid_ref[...]
    kept = valid * jnp.where(use_ohem > 0.5,
                             (nll >= nll_thr).astype(jnp.float32),
                             jnp.float32(1.0))
    acc_ref[0] += jnp.sum(nll * kept)
    acc_ref[1] += jnp.sum(kept)

    @pl.when(jnp.logical_and(bi == pl.num_programs(0) - 1,
                             ti == pl.num_programs(1) - 1))
    def _():
        # mean over kept pixels (NaN if nothing kept, matching torch's 0/0)
        out_ref[0, 0] = acc_ref[0] / acc_ref[1]


def _pick_tile_hw(hw_pad, c, itemsize, max_lanes=2048):
    """Largest multiple of 128 dividing hw_pad, capped so the logits block
    (x2 for double-buffering) stays well inside every generation's scoped
    VMEM default (incl. v7x's smaller 64 MiB physical / 32 MiB scoped)."""
    budget = 4 * 1024 * 1024  # bytes for one logits block
    cap = (budget // max(1, c * itemsize)) // 128 * 128
    cap = max(128, min(max_lanes, cap, hw_pad))
    for cand in range(cap, 127, -128):
        if hw_pad % cand == 0:
            return cand
    return 128


def ohem_cross_entropy_2d(pred, target, *, ignore_index=255, thresh=0.7,
                          min_kept=10000):
    b, c, h, w = pred.shape
    hw = h * w
    n = b * hw
    hw_pad = pl.cdiv(hw, 128) * 128
    tile_hw = _pick_tile_hw(hw_pad, c, pred.dtype.itemsize)

    # Native layout, no transpose / no dtype upcast: (b, c, hw), pixels on lanes.
    logits = pred.reshape(b, c, hw)
    tgt = target.reshape(b, 1, hw).astype(jnp.int32)
    if hw_pad != hw:
        # Tail-only pad (only when hw is not a multiple of 128). Padded pixels
        # carry ignore_index so they are never valid / never kept.
        logits = jnp.pad(logits, ((0, 0), (0, 0), (0, hw_pad - hw)))
        tgt = jnp.pad(tgt, ((0, 0), (0, 0), (0, hw_pad - hw)),
                      constant_values=ignore_index)

    grid = (b, hw_pad // tile_hw)
    col = jax.ShapeDtypeStruct((b, 1, hw_pad), jnp.float32)

    nll, valid = pl.pallas_call(
        functools.partial(_stats_kernel, ignore_index),
        out_shape=(col, col),
        grid_spec=pltpu.PrefetchScalarGridSpec(
            num_scalar_prefetch=0,
            grid=grid,
            in_specs=[pl.BlockSpec((None, c, tile_hw), lambda bi, ti: (bi, 0, ti)),
                      pl.BlockSpec((None, 1, tile_hw), lambda bi, ti: (bi, 0, ti))],
            out_specs=[pl.BlockSpec((None, 1, tile_hw), lambda bi, ti: (bi, 0, ti)),
                       pl.BlockSpec((None, 1, tile_hw), lambda bi, ti: (bi, 0, ti))],
        ),
        compiler_params=pltpu.CompilerParams(
            dimension_semantics=("parallel", "parallel")),
    )(logits, tgt)

    # Real (un-padded) pixels only for the OHEM threshold selection.
    nll_real = nll[:, 0, :hw].reshape(-1)
    valid_real = valid[:, 0, :hw].reshape(-1)
    num_valid = jnp.sum(valid_real)

    neg_log_thresh = jnp.float32(-math.log(thresh))
    if min_kept > 0:
        # kth-smallest gt-prob == kth-largest nll_eff; top_k(k=min_kept)
        # instead of a full sort over all N pixels.
        k = min(n, int(min_kept))
        kth_nll = lax.top_k(nll_real, k)[0][k - 1]
        # threshold_prob = max(kth_prob, thresh)  ->  nll_thr = -log(threshold_prob)
        nll_thr = jnp.minimum(kth_nll, neg_log_thresh)
        use_ohem = num_valid >= jnp.float32(min_kept)
    else:
        # PyTorch applies no OHEM filtering at all when min_kept == 0.
        nll_thr = neg_log_thresh
        use_ohem = jnp.bool_(False)

    # TODO(synk): PyTorch prints "Labels: N" when min_kept > num_valid
    # (data-dependent debug print) -- omitted.
    scalars = jnp.stack([nll_thr,
                         use_ohem.astype(jnp.float32)]).astype(jnp.float32)

    loss = pl.pallas_call(
        _loss_kernel,
        out_shape=jax.ShapeDtypeStruct((1, 1), jnp.float32),
        grid_spec=pltpu.PrefetchScalarGridSpec(
            num_scalar_prefetch=0,
            grid=grid,
            in_specs=[pl.BlockSpec(memory_space=pltpu.MemorySpace.SMEM),
                      pl.BlockSpec((None, 1, tile_hw), lambda bi, ti: (bi, 0, ti)),
                      pl.BlockSpec((None, 1, tile_hw), lambda bi, ti: (bi, 0, ti))],
            out_specs=pl.BlockSpec(memory_space=pltpu.MemorySpace.SMEM),
            scratch_shapes=[pltpu.SMEM((2,), jnp.float32)],
        ),
        compiler_params=pltpu.CompilerParams(
            dimension_semantics=("arbitrary", "arbitrary")),
    )(scalars, nll, valid)

    return loss[0, 0]


def _reference(pred, target, ignore_index, thresh, min_kept):
    """Pure-JAX mirror of the PyTorch forward (use_weight=False)."""
    b, c, h, w = pred.shape
    tgt = target.reshape(-1)
    valid = tgt != ignore_index
    num_valid = jnp.sum(valid)
    logits = pred.transpose(0, 2, 3, 1).reshape(-1, c).astype(jnp.float32)
    logp = jax.nn.log_softmax(logits, axis=-1)
    t_safe = jnp.where(valid, tgt, 0)
    nll = -jnp.take_along_axis(logp, t_safe[:, None], axis=-1)[:, 0]
    mask_prob = jnp.where(valid, jnp.exp(-nll), 1.0)
    if min_kept > 0:
        kth = jnp.sort(mask_prob)[min(mask_prob.shape[0], min_kept) - 1]
        threshold = jnp.maximum(kth, jnp.float32(thresh))
        use_ohem = (num_valid >= min_kept) & (num_valid > 0)
        kept = (valid & jnp.where(use_ohem, mask_prob <= threshold, True)
                ).astype(jnp.float32)
    else:
        kept = valid.astype(jnp.float32)
    return jnp.sum(nll * kept) / jnp.sum(kept)


if __name__ == "__main__":
    key = jax.random.PRNGKey(0)
    b, c, h, w = 2, 4, 16, 16
    k1, k2, k3 = jax.random.split(key, 3)

    pred = jax.random.normal(k1, (b, c, h, w), dtype=jnp.float32)
    target = jax.random.randint(k2, (b, h, w), 0, c).astype(jnp.int32)
    # sprinkle some ignore_index pixels
    ignore_mask = jax.random.uniform(k3, (b, h, w)) < 0.1
    target = jnp.where(ignore_mask, 255, target)

    # min_kept=100 (< b*h*w) so the OHEM hard-example-mining path is exercised
    # at this small spatial size; the module default of 10000 also runs.
    loss = ohem_cross_entropy_2d(pred, target, ignore_index=255,
                                 thresh=0.7, min_kept=100)
    loss = jax.block_until_ready(loss)

    ref = _reference(pred, target, 255, 0.7, 100)
    assert jnp.allclose(loss, ref, rtol=1e-4, atol=1e-5), (loss, ref)

    print("KERNEL_OK")
</pallas_src>

<mosaic_0001>
module attributes {stable_mosaic.version = 11 : i64} {
  func.func @_stats_kernel(%arg0: i32, %arg1: i32, %arg2: memref<1x4x256xf32, #tpu.memory_space<vmem>>, %arg3: memref<1x1x256xi32, #tpu.memory_space<vmem>>, %arg4: memref<1x1x256xf32, #tpu.memory_space<vmem>>, %arg5: memref<1x1x256xf32, #tpu.memory_space<vmem>>) attributes {dimension_semantics = [#tpu.dimension_semantics<parallel>, #tpu.dimension_semantics<parallel>], iteration_bounds = array<i64: 2, 1>, scalar_prefetch = 0 : i64, scratch_operands = 0 : i64, tpu.core_type = #tpu.core_type<tc>, window_params = [{transform_indices = @transform_0, window_bounds = array<i64: 1, 4, 256>}, {transform_indices = @transform_1, window_bounds = array<i64: 1, 1, 256>}, {transform_indices = @transform_2, window_bounds = array<i64: 1, 1, 256>}, {transform_indices = @transform_3, window_bounds = array<i64: 1, 1, 256>}]} {
    %c0 = arith.constant 0 : index
    %c0_0 = arith.constant 0 : index
    %c0_1 = arith.constant 0 : index
    %0 = vector.load %arg2[%c0, %c0_0, %c0_1] : memref<1x4x256xf32, #tpu.memory_space<vmem>>, vector<1x4x256xf32>
    %1 = vector.shape_cast %0 : vector<1x4x256xf32> to vector<4x256xf32>
    %c0_2 = arith.constant 0 : index
    %c0_3 = arith.constant 0 : index
    %c0_4 = arith.constant 0 : index
    %2 = vector.load %arg3[%c0_2, %c0_3, %c0_4] : memref<1x1x256xi32, #tpu.memory_space<vmem>>, vector<1x1x256xi32>
    %3 = vector.shape_cast %2 : vector<1x1x256xi32> to vector<1x256xi32>
    %c255_i32 = arith.constant 255 : i32
    %4 = vector.broadcast %c255_i32 : i32 to vector<1x256xi32>
    %5 = arith.cmpi ne, %3, %4 : vector<1x256xi32>
    %c0_i32 = arith.constant 0 : i32
    %6 = vector.broadcast %c0_i32 : i32 to vector<1x256xi32>
    %7 = arith.select %5, %3, %6 : vector<1x256xi1>, vector<1x256xi32>
    %cst = arith.constant dense<0xFF800000> : vector<256xf32>
    %8 = vector.multi_reduction <maximumf>, %1, %cst [0] : vector<4x256xf32> to vector<256xf32>
    %9 = vector.shape_cast %8 : vector<256xf32> to vector<1x256xf32>
    %10 = vector.broadcast %9 : vector<1x256xf32> to vector<4x256xf32>
    %11 = arith.subf %1, %10 : vector<4x256xf32>
    %12 = math.exp %11 : vector<4x256xf32>
    %cst_5 = arith.constant dense<0.000000e+00> : vector<256xf32>
    %13 = vector.multi_reduction <add>, %12, %cst_5 [0] : vector<4x256xf32> to vector<256xf32>
    %14 = vector.shape_cast %13 : vector<256xf32> to vector<1x256xf32>
    %15 = math.log %14 : vector<1x256xf32>
    %16 = arith.addf %9, %15 : vector<1x256xf32>
    %17 = tpu.iota {dimensions = array<i32: 0>} : vector<4x256xi32>
    %18 = vector.broadcast %7 : vector<1x256xi32> to vector<4x256xi32>
    %19 = arith.cmpi eq, %17, %18 : vector<4x256xi32>
    %cst_6 = arith.constant 0.000000e+00 : f32
    %20 = vector.broadcast %cst_6 : f32 to vector<4x256xf32>
    %21 = arith.select %19, %1, %20 : vector<4x256xi1>, vector<4x256xf32>
    %cst_7 = arith.constant dense<0.000000e+00> : vector<256xf32>
    %22 = vector.multi_reduction <add>, %21, %cst_7 [0] : vector<4x256xf32> to vector<256xf32>
    %23 = vector.shape_cast %22 : vector<256xf32> to vector<1x256xf32>
    %24 = arith.subf %16, %23 : vector<1x256xf32>
    %cst_8 = arith.constant 0.000000e+00 : f32
    %25 = vector.broadcast %cst_8 : f32 to vector<1x256xf32>
    %26 = arith.select %5, %24, %25 : vector<1x256xi1>, vector<1x256xf32>
    %c0_9 = arith.constant 0 : index
    %c0_10 = arith.constant 0 : index
    %c0_11 = arith.constant 0 : index
    %27 = vector.load %arg4[%c0_9, %c0_10, %c0_11] : memref<1x1x256xf32, #tpu.memory_space<vmem>>, vector<1x1x256xf32>
    %28 = vector.shape_cast %27 : vector<1x1x256xf32> to vector<1x256xf32>
    %29 = vector.shape_cast %26 : vector<1x256xf32> to vector<1x1x256xf32>
    tpu.vector_store %arg4[%c0_9, %c0_10, %c0_11], %29 {strides = array<i32>} : memref<1x1x256xf32, #tpu.memory_space<vmem>>, vector<1x1x256xf32>,
    %30 = arith.extui %5 : vector<1x256xi1> to vector<1x256xi32>
    %31 = arith.sitofp %30 : vector<1x256xi32> to vector<1x256xf32>
    %c0_12 = arith.constant 0 : index
    %c0_13 = arith.constant 0 : index
    %c0_14 = arith.constant 0 : index
    %32 = vector.load %arg5[%c0_12, %c0_13, %c0_14] : memref<1x1x256xf32, #tpu.memory_space<vmem>>, vector<1x1x256xf32>
    %33 = vector.shape_cast %32 : vector<1x1x256xf32> to vector<1x256xf32>
    %34 = vector.shape_cast %31 : vector<1x256xf32> to vector<1x1x256xf32>
    tpu.vector_store %arg5[%c0_12, %c0_13, %c0_14], %34 {strides = array<i32>} : memref<1x1x256xf32, #tpu.memory_space<vmem>>, vector<1x1x256xf32>,
    return
  }
  func.func @transform_0(%arg0: i32, %arg1: i32) -> (i32, i32, i32) {
    %c0_i32 = arith.constant 0 : i32
    %c0_i32_0 = arith.constant 0 : i32
    return %arg0, %c0_i32, %arg1 : i32, i32, i32
  }
  func.func @transform_1(%arg0: i32, %arg1: i32) -> (i32, i32, i32) {
    %c0_i32 = arith.constant 0 : i32
    %c0_i32_0 = arith.constant 0 : i32
    return %arg0, %c0_i32, %arg1 : i32, i32, i32
  }
  func.func @transform_2(%arg0: i32, %arg1: i32) -> (i32, i32, i32) {
    %c0_i32 = arith.constant 0 : i32
    %c0_i32_0 = arith.constant 0 : i32
    return %arg0, %c0_i32, %arg1 : i32, i32, i32
  }
  func.func @transform_3(%arg0: i32, %arg1: i32) -> (i32, i32, i32) {
    %c0_i32 = arith.constant 0 : i32
    %c0_i32_0 = arith.constant 0 : i32
    return %arg0, %c0_i32, %arg1 : i32, i32, i32
  }
}

</mosaic_0001>

<bundles_post_ra>
// kernel: tpu_custom_call.1
= control target key start
LH: loop header
LB: loop body
LE: loop exit
PB: predicated region body
PF: predicated region fallthrough
CT: control target
= control target key end

     0   :  { %9 = vsyncpa [#allocation3], 0  ;;  %s1105_s0 = inlined_call_operand.hbm [shape: f32[2,4,256], index: 0, kind: input, shape index: {}]   ;;  %s1106_s1 = inlined_call_operand.hbm [shape: s32[2,1,256], index: 1, kind: input, shape index: {}]   ;;  %s1107_s2 = inlined_call_operand.hbm [shape: f32[2,1,256], index: 2, kind: output, shape index: {0}]   ;;  %s1108_s3 = inlined_call_operand.hbm [shape: f32[2,1,256], index: 3, kind: output, shape index: {1}]  }
   0x1   :  { %11 = vsyncpa [#allocation3 + $0x1], 0 }
   0x2   :  { %12 = vsyncpa [#allocation6], 0 }
   0x3   :  { %14 = vsyncpa [#allocation6 + $0x1], 0 }
   0x4   :  { %15 = vsyncpa [#allocation4], 0 }
   0x5   :  { %17 = vsyncpa [#allocation4 + $0x1], 0 }
   0x6   :  { %18 = vsyncpa [#allocation9], 0 }
   0x7   :  { %20 = vsyncpa [#allocation9 + $0x1], 0  ;;  %s863_s12 = smov 0   ;;  %s865_s13 = smov 0  }
   0x8   :  { %s867_s14 = smov 0   ;;  %s869_s15 = smov 0  }
   0x9   :  { %s871_s16 = smov 0   ;;  %s873_s17 = smov 0  }
   0xa LB: > { %s556_s18 = sadd.s32 4294967295, %s835_s17   ;;  %s557_s19 = sadd.s32 4294967294, %s835_s17   ;;  %s835_s17 = sphi %s873_s17, %s26_s17   ;;  %s831_s16 = sphi %s871_s16, %s1122_s16   ;;  %s827_s15 = sphi %s869_s15, %s1121_s15   ;;  %s823_s14 = sphi %s867_s14, %s1120_s14   ;;  %s819_s13 = sphi %s865_s13, %s1119_s13   ;;  %s815_s12 = sphi %s863_s12, %s1118_s12  }
   0xb   : > { %s38_s20 = sadd.s32 1, %s831_s16  ;;  %s47_s21 = sadd.s32 1, %s823_s14 }
   0xc   : > { %p40_p0 = scmp.ge.s32.totalorder %s38_s20, 2  ;;  %p54_p1 = scmp.ne.s32.totalorder %s823_s14, %s819_s13 }
   0xd   : > { %p55_p2 = scmp.eq.s32.totalorder %s835_s17, 0  ;;  %p60_p3 = scmp.ne.s32.totalorder %s819_s13, %s815_s12 }
   0xe   : > { %s1124_s20 = smov (%p40_p0, %s38_s20), 0  ;;  %p61_p5 = scmp.eq.s32.totalorder %s556_s18, 0 }
   0xf   : > { %p904_p4 = por %p55_p2, %p54_p1  ;;  %s42_s23 = ssub.s32 %s831_s16, %s1124_s20 }
  0x10   : > { %p114_p6 = scmp.eq.s32.totalorder %s556_s18, 1  ;;  %p45_p7 = scmp.eq.s32.totalorder %s42_s23, 0 }
  0x11   : > { %p910_p8 = por %p61_p5, %p60_p3  ;;  %p120_p10 = scmp.eq.s32.totalorder %s557_s19, 1 }
  0x12   : > { %p914_p9 = por %p114_p6, %p54_p1  ;;  %p606_p13 = scmp.lt.s32.totalorder %s835_s17, 2 }
  0x13   : > { %s919_s26 = scalar_select %p45_p7, %s823_s14, %s47_s21  }
  0x14   : > { %p921_p11 = por %p120_p10, %p60_p3  ;;  %s928_s28 = sand.u32 1, %s823_s14  }
  0x15   : > { %s560_s29 = sshll.u32 %s928_s28, 3  ;;  %s580_s30 = sshll.u32 %s831_s16, 7 }
  0x16   : > { %s180_s6 = scalar_lea.hbm %s1105_s0, %s580_s30  ;;  %s172_s7 = scalar_lea.vmem [#allocation2], %s560_s29 }
  0x17   : > { %s182_s8 = sshll.u32 %s172_s7, 4  ;;  %p937_p0 = pnand %p606_p13, %p904_p4  ;;  %s183_s8 = int_to_ptr.vmem [resolvable:$true] %s182_s8 }
  0x18   : > { %p566_p1 = scmp.ge.s32.totalorder %s835_s17, 1  ;;  %p208_p2 = scmp.lt.s32.totalorder %s835_s17, 3 }
  0x19   : > { %s169_s10 = scalar_lea.sflag [#allocation3], %s928_s28  ;;  %p667_p3 = pneg %p937_p0 }
  0x1a   : > { %s678_s11 = scalar_lea.vmem %s183_s8, 128  ;;  %s837_s18 = smov [#allocation2]  }
  0x1b   : > { %p679_p5 = scmp.ne.s32.totalorder %s183_s8, %s678_s11  ;;  %s683_s19 = sshll.u32 %s837_s18, 4  ;;  %s684_s19 = int_to_ptr.vmem [resolvable:$false] %s683_s19 }
  0x1c   : > { %s685_s21 = scalar_lea.vmem %s684_s19, 256  ;;  %p686_p4 = scmp.lt.s32.totalorder %s183_s8, %s684_s19 }
  0x1d   : > { %p681_p6 = pnand %p679_p5, %p667_p3  ;;  %p687_p10 = scmp.lt.s32.totalorder %s685_s21, %s678_s11 }
  0x1f   : > { %p682_p7 = pneg %p681_p6  ;;  %p688_p13 = por %p687_p10, %p686_p4 }
  0x21   : > { %p689_p12 = pnand %p688_p13, %p682_p7 }
  0x23   : > { %692 = shalt.err (!%p689_p12)
}
  0x24   : > { %595 = dma.hbm_to_vmem [thread:$0]  (!%p937_p0), %s180_s6, 128, %s183_s8, %s169_s10  }
  0x25   : > { %p955_p5 = pnand %p566_p1, %p208_p2  ;;  %s563_s23 = sshll.u32 %s928_s28, 1 }
  0x26   : > { %s581_s29 = sshll.u32 %s831_s16, 5  ;;  %s193_s7 = scalar_lea.vmem [#allocation5], %s563_s23 }
  0x27   : > { %s201_s5 = scalar_lea.hbm %s1106_s1, %s581_s29  ;;  %s203_s11 = sshll.u32 %s193_s7, 4  ;;  %s204_s11 = int_to_ptr.vmem [resolvable:$true] %s203_s11 }
  0x28   : > { %s190_s18 = scalar_lea.sflag [#allocation6], %s928_s28  ;;  %s706_s19 = scalar_lea.vmem %s204_s11, 32 }
  0x29   : > { %p707_p12 = scmp.ne.s32.totalorder %s204_s11, %s706_s19  ;;  %s838_s6 = smov [#allocation5]  }
  0x2a   : > { %s711_s8 = sshll.u32 %s838_s6, 4  ;;  %s712_s8 = int_to_ptr.vmem [resolvable:$false] %s711_s8 }
  0x2b   : > { %p709_p6 = pnand %p707_p12, %p667_p3  ;;  %s713_s10 = scalar_lea.vmem %s712_s8, 64 }
  0x2c   : > { %p714_p1 = scmp.lt.s32.totalorder %s204_s11, %s712_s8  ;;  %p715_p2 = scmp.lt.s32.totalorder %s713_s10, %s706_s19 }
  0x2d   : > { %p710_p7 = pneg %p709_p6 }
  0x2e   : > { %p716_p4 = por %p715_p2, %p714_p1 }
  0x30   : > { %p717_p10 = pnand %p716_p4, %p710_p7 }
  0x32   : > { %720 = shalt.err (!%p717_p10)
}
  0x33   : > { %598 = dma.hbm_to_vmem [thread:$0]  (!%p937_p0), %s201_s5, 32, %s204_s11, %s190_s18  }
  0x34   : > { %212 = sbr.rel (%p955_p5) target bundleno = 169 (0xa9), region = 28  ;;  %s973_s28 = sand.u32 (!%p955_p5), 1, %s819_s13  }
  0x35   : > { %s567_s21 = sshll.u32 (!%p955_p5), %s973_s28, 3  ;;  %s215_s23 = scalar_lea.sflag (!%p955_p5), [#allocation3], %s973_s28 }
  0x36   : > { %s218_s29 = scalar_lea.vmem (!%p955_p5), [#allocation2], %s567_s21 }
  0x39   : > { %798 = dma.done.wait (%p910_p8), %s215_s23, 128  }
  0x3a   : > { %800 = vsyncadd (%p910_p8), %s215_s23, 4294967168  ;;  %s982_s9 = sshll.u32 %s973_s28, 1  ;;  %s224_s22 = scalar_lea.sflag [#allocation6], %s973_s28 }
  0x3b   : > { %s227_s30 = scalar_lea.vmem [#allocation5], %s982_s9 }
  0x3c   : > { %802 = dma.done.wait (%p910_p8), %s224_s22, 32  }
  0x3d   : > { %804 = vsyncadd (%p910_p8), %s224_s22, 4294967264  ;;  %s259_s4 = scalar_lea.vmem [#allocation8], %s982_s9  ;;  %vm271_vm0 = vcmask 1043456   ;;  %v316_v0 = vlaneseq  ;;  %s582_s7 = sshll.u32 %s827_s15, 5  ;;  %v992_v1 = vld [vmem:[%s218_s29] sm:$0xff]  ;;  %v839_v7 = vmov 0.0  }
  0x3e   : > { %s411_s5 = sshll.u32 %s259_s4, 4  ;;  %v994_v2 = vld [vmem:[%s227_s30] sm:$0x3]  ;;  %v1005_v4 = vcombine.high %v992_v1, %v992_v1  ;;  %v272_v5 = vsel %vm271_vm0, %v992_v1, -inf  ;;  %s1014_s18 = scalar_lea.hbm %s1108_s3, %s582_s7  ;;  %s1000_s5 = int_to_ptr.vmem [resolvable:$true] %s411_s5 }
  0x3f   : > { %vm996_vm1 = vcmp.lt.s32.totalorder %v316_v0, 256  ;;  %vm266_vm2 = vcmp.ne.s32.totalorder %v994_v2, 255  ;;  %v273_v6 = vrot.slane %v272_v5, 4  ;;  %s379_s19 = scalar_lea.sflag [#allocation9], %s973_s28  ;;  %s721_s6 = scalar_lea.vmem %s1000_s5, 32 }
  0x40   : > { %v571_v8 = vsel %vm266_vm2, 1.0, %v839_v7  ;;  %v279_v9 = vsel %vm271_vm0, %v1005_v4, -inf  ;;  %p722_p8 = scmp.ne.s32.totalorder %s1000_s5, %s721_s6  ;;  %s840_s8 = smov [#allocation8]  }
  0x41   : > { %372 = vst.msk [vmem:[%s259_s4] sm:$0x3] %vm996_vm1, %v571_v8  ;;  %v274_v10 = vmax.f32 %v272_v5, %v273_v6  ;;  %v280_v11 = vrot.slane %v279_v9, 4  ;;  %s725_s10 = sshll.u32 %s840_s8, 4  ;;  %s726_s10 = int_to_ptr.vmem [resolvable:$false] %s725_s10 }
  0x42   : > { %p723_p0 = pnand %p722_p8, %p914_p9  ;;  %s727_s21 = scalar_lea.vmem %s726_s10, 64 }
  0x43   : > { %p728_p13 = scmp.lt.s32.totalorder %s1000_s5, %s726_s10  ;;  %p729_p5 = scmp.lt.s32.totalorder %s727_s21, %s721_s6 }
  0x44   : > { %p724_p3 = pneg %p723_p0 }
  0x45   : > { %p730_p12 = por %p729_p5, %p728_p13 }
  0x47   : > { %p731_p6 = pnand %p730_p12, %p724_p3 }
  0x49   : > { %734 = shalt.err (!%p731_p6)
}
  0x4a   : > { %s735_s23 = scalar_lea.hbm %s1014_s18, 32  ;;  %s739_s30 = scalar_lea.hbm %s1108_s3, 64 }
  0x4b   : > { %p736_p7 = scmp.ne.s32.totalorder %s1014_s18, %s735_s23  ;;  %p740_p4 = scmp.lt.s32.totalorder %s1014_s18, %s1108_s3 }
  0x4c   : > { %p741_p10 = scmp.lt.s32.totalorder %s739_s30, %s735_s23 }
  0x4d   : > { %p737_p1 = pnand %p736_p7, %p914_p9 }
  0x4e   : > { %p742_p8 = por %p741_p10, %p740_p4 }
  0x4f   : > { %p738_p2 = pneg %p737_p1 }
  0x51   : > { %p743_p0 = pnand %p742_p8, %p738_p2 }
  0x53   : > { %746 = shalt.err (!%p743_p0)
}
  0x54   : > { %589 = dma.vmem_to_hbm [thread:$0]  (%p914_p9), %s1000_s5, 32, %s1014_s18, %s379_s19   ;;  %v275_v12 = vrot.slane %v274_v10, 2  ;;  %v281_v13 = vmax.f32 %v279_v9, %v280_v11  ;;  %v317_v24 = vshrl.u32 %v316_v0, 7  ;;  %v267_v26 = vsel %vm266_vm2, %v994_v2, 0 }
  0x55   : > { %v841_v60 = vmov 1966171168   ;;  %s252_s5 = scalar_lea.vmem [#allocation7], %s982_s9  ;;  %s393_s6 = scalar_lea.hbm %s1107_s2, %s582_s7 }
  0x56   : > { %v276_v14 = vmax.f32 %v274_v10, %v275_v12  ;;  %v282_v15 = vrot.slane %v281_v13, 2  ;;  %v320_v25 = vsub.s32 0, %v317_v24  ;;  %v324_v27 = vsub.s32 1, %v317_v24  ;;  %s395_s11 = sshll.u32 %s252_s5, 4  ;;  %s374_s9 = scalar_lea.sflag [#allocation4], %s973_s28  ;;  %s1054_s11 = int_to_ptr.vmem [resolvable:$true] %s395_s11 }
  0x57   : > { %v350_v61 = vunpack.c.l.s4 %v841_v60  ;;  %s747_s8 = scalar_lea.vmem %s1054_s11, 32  ;;  %s842_s15 = smov [#allocation7]  }
  0x58   : > { %v277_v16 = vrot.slane %v276_v14, 1  ;;  %v283_v17 = vmax.f32 %v281_v13, %v282_v15  ;;  %v321_v28 = vrot.slane %v267_v26, %v320_v25  ;;  %v325_v29 = vrot.slane %v267_v26, %v324_v27  ;;  %p748_p3 = scmp.ne.s32.totalorder %s1054_s11, %s747_s8  ;;  %s751_s10 = sshll.u32 %s842_s15, 4  ;;  %s752_s10 = int_to_ptr.vmem [resolvable:$false] %s751_s10 }
  0x59   : > { %v351_v7 = vunpack.c.0.s8 %v350_v61  ;;  %s753_s21 = scalar_lea.vmem %s752_s10, 64  ;;  %p754_p12 = scmp.lt.s32.totalorder %s1054_s11, %s752_s10 }
  0x5a   : > { %v278_v18 = vmax.f32 %v276_v14, %v277_v16  ;;  %v284_v19 = vrot.slane %v283_v17, 1  ;;  %vm326_vm3 = vcmp.eq.s32.totalorder %v317_v24, %v321_v28  ;;  %vm327_vm4 = vcmp.eq.s32.totalorder %v317_v24, %v325_v29  ;;  %p749_p13 = pnand %p748_p3, %p914_p9  ;;  %p755_p6 = scmp.lt.s32.totalorder %s753_s21, %s747_s8 }
  0x5b   : > { %v328_v34 = vsel %vm326_vm3, %v992_v1, 0.0  ;;  %v329_v38 = vsel %vm327_vm4, %v1005_v4, 0.0  ;;  %v354_v11 = vsub.s32 %v351_v7, %v317_v24 }
  0x5c   : > { %v285_v20 = vmax.f32 %v283_v17, %v284_v19  ;;  %v330_v39 = vsel %vm271_vm0, %v328_v34, 0.0  ;;  %v337_v42 = vsel %vm271_vm0, %v329_v38, 0.0  ;;  %p750_p5 = pneg %p749_p13  ;;  %p756_p7 = por %p755_p6, %p754_p12 }
  0x5d   : > { %v331_v45 = vrot.slane %v330_v39, 4  ;;  %v338_v48 = vrot.slane %v337_v42, 4 }
  0x5e   : > { %v288_v21 = vcombine.low %v278_v18, %v285_v20  ;;  %p757_p1 = pnand %p756_p7, %p750_p5 }
  0x5f   : > { %v332_v51 = vadd.f32 %v331_v45, %v330_v39  ;;  %v339_v53 = vadd.f32 %v338_v48, %v337_v42 }
  0x60   : > { %v290_v22 = vsub.f32 %v992_v1, %v288_v21 }
  0x61   : > { %v333_v54 = vrot.slane %v332_v51, 2  ;;  %v340_v55 = vrot.slane %v339_v53, 2 }
  0x62   : > { %v291_v23 = vmul.f32 1.442695, %v290_v22 }
  0x63   : > { %v334_v56 = vadd.f32 %v333_v54, %v332_v51  ;;  %v341_v57 = vadd.f32 %v340_v55, %v339_v53 }
  0x64   : > { %659 = vpow2.f32 %v291_v23 }
  0x65   : > { %v335_v58 = vrot.slane %v334_v56, 1  ;;  %v342_v59 = vrot.slane %v341_v57, 1 }
  0x67   : > { %v336_v0 = vadd.f32 %v335_v58, %v334_v56  ;;  %v343_v6 = vadd.f32 %v342_v59, %v341_v57 }
  0x71   : > { %v660_v30 = vpop.eup %659 }
  0x72   : > { %v294_v31 = vcombine.high %v660_v30, %v660_v30  ;;  %v296_v32 = vsel %vm271_vm0, %v660_v30, 0.0 }
  0x73   : > { %v297_v33 = vrot.slane %v296_v32, 4 }
  0x74   : > { %v303_v35 = vsel %vm271_vm0, %v294_v31, 0.0 }
  0x75   : > { %v298_v36 = vadd.f32 %v297_v33, %v296_v32  ;;  %v304_v37 = vrot.slane %v303_v35, 4 }
  0x77   : > { %v299_v40 = vrot.slane %v298_v36, 2  ;;  %v305_v41 = vadd.f32 %v304_v37, %v303_v35 }
  0x79   : > { %v300_v43 = vadd.f32 %v299_v40, %v298_v36  ;;  %v306_v44 = vrot.slane %v305_v41, 2 }
  0x7b   : > { %v301_v46 = vrot.slane %v300_v43, 1  ;;  %v307_v47 = vadd.f32 %v306_v44, %v305_v41 }
  0x7d   : > { %v302_v49 = vadd.f32 %v301_v46, %v300_v43  ;;  %v308_v50 = vrot.slane %v307_v47, 1 }
  0x7f   : > { %v309_v52 = vadd.f32 %v308_v50, %v307_v47  ;;  %661 = vlog2.f32 %v302_v49 }
  0x81   : > { %663 = vlog2.f32 %v309_v52 }
  0x8c   : > { %v662_v62 = vpop.eup %661 }
  0x8d   : > { %v311_v63 = vmul.f32 0.6931472, %v662_v62 }
  0x8e   : > { %v664_v1 = vpop.eup %663 }
  0x8f   : > { %v313_v4 = vmul.f32 0.6931472, %v664_v1  ;;  %v314_v5 = vadd.f32 %v311_v63, %v278_v18 }
  0x91   : > { %v315_v8 = vadd.f32 %v313_v4, %v285_v20  ;;  %v344_v9 = vsub.f32 %v314_v5, %v336_v0 }
  0x93   : > { %v345_v10 = vsub.f32 %v315_v8, %v343_v6 }
  0x95   : > { %v348_v12 = vcombine.low %v344_v9, %v345_v10 }
  0x97   : > { %v355_v13 = vrot.slane %v348_v12, %v354_v11 }
  0x99   : > { %v362_v14 = vrot.slane %v355_v13, %v354_v11 }
  0x9b   : > { %v364_v15 = vsel %vm266_vm2, %v362_v14, 0.0 }
  0x9c   : > { %369 = vst.msk [vmem:[%s252_s5] sm:$0x3] %vm996_vm1, %v364_v15 }
  0x9d   : > { %760 = shalt.err (!%p757_p1)
}
  0x9e   : > { %s761_s7 = scalar_lea.hbm %s393_s6, 32  ;;  %s765_s29 = scalar_lea.hbm %s1107_s2, 64 }
  0x9f   : > { %p762_p2 = scmp.ne.s32.totalorder %s393_s6, %s761_s7  ;;  %p766_p8 = scmp.lt.s32.totalorder %s393_s6, %s1107_s2 }
  0xa0   : > { %p767_p0 = scmp.lt.s32.totalorder %s765_s29, %s761_s7 }
  0xa1   : > { %p763_p4 = pnand %p762_p2, %p914_p9 }
  0xa2   : > { %p768_p3 = por %p767_p0, %p766_p8 }
  0xa3   : > { %p764_p10 = pneg %p763_p4 }
  0xa5   : > { %p769_p13 = pnand %p768_p3, %p764_p10 }
  0xa7   : > { %772 = shalt.err (!%p769_p13)
}
  0xa8   : > { %588 = dma.vmem_to_hbm [thread:$0]  (%p914_p9), %s1054_s11, 32, %s393_s6, %s374_s9  }
  0xa9 PF: > { %s423_s4 = sand.u32 1, %s815_s12   ;;  %p1117_p5 = scmp.ge.s32.totalorder %s835_s17, 2 }
  0xaa   : > { %s424_s24 = scalar_lea.sflag [#allocation4], %s423_s4 }
  0xab   : > { %p600_p12 = pnand %p1117_p5, %p921_p11 }
  0xad   : > { %p601_p6 = pneg %p600_p12 }
  0xaf   : > { %806 = dma.done.wait (%p601_p6), %s424_s24, 32  }
  0xb0   : > { %808 = vsyncadd (%p601_p6), %s424_s24, 4294967264  ;;  %s433_s5 = scalar_lea.sflag [#allocation9], %s423_s4 }
  0xb1   : > { %810 = dma.done.wait (%p601_p6), %s433_s5, 32  }
  0xb2   : > { %812 = vsyncadd (%p601_p6), %s433_s5, 4294967264  ;;  %s26_s17 = sadd.s32 1, %s835_s17   ;;  %s1118_s12 = smov %s819_s13 }
  0xb3   : > { %p23_p7 = scmp.ge.s32.totalorder %s26_s17, 4   ;;  %s1119_s13 = smov %s823_s14 }
  0xb4   : > { %s1120_s14 = smov %s919_s26  ;;  %s1121_s15 = smov %s831_s16 }
  0xb5   : > { %s1122_s16 = smov %s1124_s20  ;;  %25 = sbr.rel (!%p23_p7) target bundleno = 10 (0xa), region = 103 }
  0xba   :  { %438 = vsyncpa [#allocation3], 1 }
  0xbb   :  { %440 = vsyncpa [#allocation3 + $0x1], 1 }
  0xbc   :  { %441 = vsyncpa [#allocation6], 1 }
  0xbd   :  { %443 = vsyncpa [#allocation6 + $0x1], 1 }
  0xbe   :  { %444 = vsyncpa [#allocation4], 1 }
  0xbf   :  { %446 = vsyncpa [#allocation4 + $0x1], 1 }
  0xc0   :  { %447 = vsyncpa [#allocation9], 1 }
  0xc1   :  { %449 = vsyncpa [#allocation9 + $0x1], 1 }

</bundles_post_ra>
